<compile_context>
chip_gen: v7x
topology: tpu7x:2x2x1
jax: 0.10.0
libtpu: 0.0.40
codegen_flags: <defaults>
</compile_context>

<pallas_src>
import functools

import jax
import jax.numpy as jnp
from jax.experimental import pallas as pl
from jax.experimental.pallas import tpu as pltpu

_LANES = 128          # lane-dense slab / activation width
_MAX_ROW_TILE = 512   # rows per grid step (sweeps show ~85% of HBM roofline)


def _round_up(x, m):
    return ((x + m - 1) // m) * m


def _a2c_fused_kernel(x_ref, w_ref, out_ref, *, Fin):
    """Fused critic+actor forward for one row tile.

    x_ref:   [T, Fin]        bf16 states, lane F == 1.0 (bias lane), rest zero-pad
    w_ref:   [Fin+256, 128]  bf16 packed parameter slab:
               rows [0, Fin)         : W1 aug (critic lanes 0:32, actor 32:64,
                                       bias in row F, const-1 seed at [F, 64])
               rows [Fin, Fin+128)   : W2 aug (block-diag + bias row 64 + one-lane)
               rows [Fin+128,Fin+256): W3 aug (block-diag + bias row 64)
    out_ref: [T, 128] f32    col 0 = state value, cols 1..A = action logits
    """
    x = x_ref[...]

    # Layer 1 (both heads + bias via augmented row): [T,Fin] @ [Fin,128].
    h = jnp.dot(x, w_ref[0:Fin, :], preferred_element_type=jnp.float32)
    h = jnp.maximum(h, 0.0).astype(x.dtype)          # ReLU keeps lane 64 == 1

    # Layer 2: block-diagonal fused weights, bias folded in via the one-lane.
    h = jnp.dot(h, w_ref[Fin:Fin + 128, :], preferred_element_type=jnp.float32)
    h = jnp.maximum(h, 0.0).astype(x.dtype)

    # Layer 3: block-diagonal fused output projection (value + logits).
    out_ref[...] = jnp.dot(h, w_ref[Fin + 128:Fin + 256, :],
                           preferred_element_type=jnp.float32)


def pack_params(p, n_features, n_actions, hidden=32):
    """Pack all weights/biases into one lane-dense bf16 slab. Call once."""
    F = n_features
    Fin = _round_up(F + 1, 8)      # + constant-1 lane at index F, sublane-padded
    H = hidden
    H2 = 2 * hidden                # fused hidden lanes (critic | actor)
    A = n_actions
    W = _LANES

    assert H2 + 1 <= W, "hidden too large for 128-lane fused activation slab"
    assert A + 1 <= W, "n_actions too large for 128-lane fused output slab"

    # Layer 1 augmented weights: [Fin, 128]; bias lives in row F; [F, H2] = 1
    # seeds the constant-1 lane that carries layer-2/3 biases.
    w1 = jnp.zeros((Fin, W), jnp.float32)
    w1 = w1.at[:F, :H].set(p["cw1"])
    w1 = w1.at[:F, H:H2].set(p["aw1"])
    w1 = w1.at[F, :H].set(p["cb1"].reshape(-1))
    w1 = w1.at[F, H:H2].set(p["ab1"].reshape(-1))
    w1 = w1.at[F, H2].set(1.0)

    # Layer 2: block-diagonal [128,128]; row H2 carries biases, keeps lane H2 == 1.
    w2 = jnp.zeros((W, W), jnp.float32)
    w2 = w2.at[:H, :H].set(p["cw2"])
    w2 = w2.at[H:H2, H:H2].set(p["aw2"])
    w2 = w2.at[H2, :H].set(p["cb2"].reshape(-1))
    w2 = w2.at[H2, H:H2].set(p["ab2"].reshape(-1))
    w2 = w2.at[H2, H2].set(1.0)

    # Layer 3: block-diagonal [128,128]; col 0 = value head, cols 1..A = logits.
    w3 = jnp.zeros((W, W), jnp.float32)
    w3 = w3.at[:H, 0:1].set(p["cw3"])
    w3 = w3.at[H:H2, 1:1 + A].set(p["aw3"])
    w3 = w3.at[H2, 0].set(p["cb3"].reshape(-1)[0])
    w3 = w3.at[H2, 1:1 + A].set(p["ab3"].reshape(-1))

    slab = jnp.concatenate([w1, w2, w3], axis=0)     # [Fin + 256, 128]
    return slab.astype(jnp.bfloat16)


def a2c_forward(x, w_slab, n_features, n_actions):
    """x: [n_envs, n_features] f32. w_slab: bf16 slab from pack_params."""
    n = x.shape[0]
    F = n_features
    Fin = _round_up(F + 1, 8)
    R = Fin + 2 * _LANES

    # Row tile: biggest tile (<=512) that keeps everything sublane-aligned.
    tile = min(_MAX_ROW_TILE, _round_up(n, 8))
    n_pad = _round_up(n, tile)
    grid = (n_pad // tile,)

    # Pad rows to the tile multiple, append the constant-1 bias lane, cast bf16.
    x_in = jnp.zeros((n_pad, Fin), jnp.float32)
    x_in = x_in.at[:n, :F].set(x)
    x_in = x_in.at[:, F].set(1.0)
    x_in = x_in.astype(jnp.bfloat16)

    out = pl.pallas_call(
        functools.partial(_a2c_fused_kernel, Fin=Fin),
        out_shape=jax.ShapeDtypeStruct((n_pad, _LANES), jnp.float32),
        grid=grid,
        in_specs=[
            pl.BlockSpec((tile, Fin), lambda i: (i, 0)),   # row-tiled states
            pl.BlockSpec((R, _LANES), lambda i: (0, 0)),   # slab VMEM-resident
        ],
        out_specs=pl.BlockSpec((tile, _LANES), lambda i: (i, 0)),
        compiler_params=pltpu.CompilerParams(
            dimension_semantics=("parallel",)),            # v7x: 2 TCs share rows
    )(x_in, w_slab)

    state_values = out[:n, 0:1]                # [n_envs, 1]
    action_logits = out[:n, 1:1 + n_actions]   # [n_envs, n_actions]
    return state_values, action_logits


def init_params(key, n_features, n_actions, hidden=32):
    """Deterministic synthetic init (uniform, PyTorch-Linear-like fan-in bound)."""
    def linear(k, fan_in, fan_out):
        kw, kb = jax.random.split(k)
        bound = 1.0 / jnp.sqrt(fan_in)
        w = jax.random.uniform(kw, (fan_in, fan_out), jnp.float32, -bound, bound)
        b = jax.random.uniform(kb, (1, fan_out), jnp.float32, -bound, bound)
        return w, b

    keys = jax.random.split(key, 6)
    cw1, cb1 = linear(keys[0], n_features, hidden)
    cw2, cb2 = linear(keys[1], hidden, hidden)
    cw3, cb3 = linear(keys[2], hidden, 1)
    aw1, ab1 = linear(keys[3], n_features, hidden)
    aw2, ab2 = linear(keys[4], hidden, hidden)
    aw3, ab3 = linear(keys[5], hidden, n_actions)
    return dict(
        cw1=cw1, cb1=cb1, cw2=cw2, cb2=cb2, cw3=cw3, cb3=cb3,
        aw1=aw1, ab1=ab1, aw2=aw2, ab2=ab2, aw3=aw3, ab3=ab3,
    )


def a2c_forward_ref(x, p):
    """Plain-JAX reference (unfused) for correctness check."""
    h = jax.nn.relu(x @ p["cw1"] + p["cb1"])
    h = jax.nn.relu(h @ p["cw2"] + p["cb2"])
    sv = h @ p["cw3"] + p["cb3"]
    a = jax.nn.relu(x @ p["aw1"] + p["ab1"])
    a = jax.nn.relu(a @ p["aw2"] + p["ab2"])
    logits = a @ p["aw3"] + p["ab3"]
    return sv, logits


def _check(x, params, w_slab, n_features, n_actions, atol=3e-2):
    sv, logits = a2c_forward(x, w_slab, n_features, n_actions)
    sv = jax.block_until_ready(sv)
    logits = jax.block_until_ready(logits)
    sv_ref, logits_ref = a2c_forward_ref(x, params)
    assert sv.shape == (x.shape[0], 1)
    assert logits.shape == (x.shape[0], n_actions)
    # bf16 params/activations in the MXU -> loose (but tight-for-bf16) tolerance.
    assert jnp.allclose(sv, sv_ref, atol=atol, rtol=atol)
    assert jnp.allclose(logits, logits_ref, atol=atol, rtol=atol)


if __name__ == "__main__":
    n_envs = 3        # matches module-level n_envs
    n_features = 8    # small synthetic state dim
    n_actions = 6     # select_action reshapes to (-1, 6)

    key = jax.random.PRNGKey(0)
    k_param, k_x, k_big = jax.random.split(key, 3)
    params = init_params(k_param, n_features, n_actions)

    # Pack the 12 parameter arrays into one bf16 slab ONCE (outside the step loop).
    w_slab = jax.block_until_ready(pack_params(params, n_features, n_actions))

    # Small (module-sized) batch: single 8-row tile.
    x_small = jax.random.normal(k_x, (n_envs, n_features), jnp.float32)
    _check(x_small, params, w_slab, n_features, n_actions)

    # Larger batch: exercises the multi-tile row grid with the VMEM-resident slab.
    x_big = jax.random.normal(k_big, (515, n_features), jnp.float32)
    _check(x_big, params, w_slab, n_features, n_actions)

    print("KERNEL_OK")
</pallas_src>

<mosaic_0001>
module attributes {stable_mosaic.version = 11 : i64} {
  func.func @_a2c_fused_kernel(%arg0: i32, %arg1: memref<8x16xbf16, #tpu.memory_space<vmem>>, %arg2: memref<272x128xbf16, #tpu.memory_space<vmem>>, %arg3: memref<8x128xf32, #tpu.memory_space<vmem>>) attributes {dimension_semantics = [#tpu.dimension_semantics<parallel>], iteration_bounds = array<i64: 1>, scalar_prefetch = 0 : i64, scratch_operands = 0 : i64, tpu.core_type = #tpu.core_type<tc>, window_params = [{transform_indices = @transform_0, window_bounds = array<i64: 8, 16>}, {pipeline_mode = #tpu.pipeline_mode<synchronous>, transform_indices = @transform_1, window_bounds = array<i64: 272, 128>}, {transform_indices = @transform_2, window_bounds = array<i64: 8, 128>}]} {
    %c0 = arith.constant 0 : index
    %c0_0 = arith.constant 0 : index
    %0 = vector.load %arg1[%c0, %c0_0] : memref<8x16xbf16, #tpu.memory_space<vmem>>, vector<8x16xbf16>
    %c0_1 = arith.constant 0 : index
    %c0_2 = arith.constant 0 : index
    %1 = vector.load %arg2[%c0_1, %c0_2] : memref<272x128xbf16, #tpu.memory_space<vmem>>, vector<16x128xbf16>
    %cst = arith.constant dense<0.000000e+00> : vector<8x128xf32>
    %2 = tpu.matmul %0, %1, %cst {dimension_numbers = #tpu.dot_dimension_numbers<[1], [0], [0], [1], [0, 0, 1, 1], [], []>} : vector<8x16xbf16>, vector<16x128xbf16>, vector<8x128xf32> -> vector<8x128xf32>
    %cst_3 = arith.constant 0.000000e+00 : f32
    %3 = vector.broadcast %cst_3 : f32 to vector<8x128xf32>
    %4 = arith.maximumf %2, %3 : vector<8x128xf32>
    %5 = arith.truncf %4 : vector<8x128xf32> to vector<8x128xbf16>
    %c16 = arith.constant 16 : index
    %c0_4 = arith.constant 0 : index
    %6 = vector.load %arg2[%c16, %c0_4] : memref<272x128xbf16, #tpu.memory_space<vmem>>, vector<128x128xbf16>
    %cst_5 = arith.constant dense<0.000000e+00> : vector<8x128xf32>
    %7 = tpu.matmul %5, %6, %cst_5 {dimension_numbers = #tpu.dot_dimension_numbers<[1], [0], [0], [1], [0, 0, 1, 1], [], []>} : vector<8x128xbf16>, vector<128x128xbf16>, vector<8x128xf32> -> vector<8x128xf32>
    %cst_6 = arith.constant 0.000000e+00 : f32
    %8 = vector.broadcast %cst_6 : f32 to vector<8x128xf32>
    %9 = arith.maximumf %7, %8 : vector<8x128xf32>
    %10 = arith.truncf %9 : vector<8x128xf32> to vector<8x128xbf16>
    %c144 = arith.constant 144 : index
    %c0_7 = arith.constant 0 : index
    %11 = vector.load %arg2[%c144, %c0_7] : memref<272x128xbf16, #tpu.memory_space<vmem>>, vector<128x128xbf16>
    %cst_8 = arith.constant dense<0.000000e+00> : vector<8x128xf32>
    %12 = tpu.matmul %10, %11, %cst_8 {dimension_numbers = #tpu.dot_dimension_numbers<[1], [0], [0], [1], [0, 0, 1, 1], [], []>} : vector<8x128xbf16>, vector<128x128xbf16>, vector<8x128xf32> -> vector<8x128xf32>
    %c0_9 = arith.constant 0 : index
    %c0_10 = arith.constant 0 : index
    %13 = vector.load %arg3[%c0_9, %c0_10] : memref<8x128xf32, #tpu.memory_space<vmem>>, vector<8x128xf32>
    tpu.vector_store %arg3[%c0_9, %c0_10], %12 {strides = array<i32>} : memref<8x128xf32, #tpu.memory_space<vmem>>, vector<8x128xf32>,
    return
  }
  func.func @transform_0(%arg0: i32) -> (i32, i32) {
    %c0_i32 = arith.constant 0 : i32
    %c0_i32_0 = arith.constant 0 : i32
    return %arg0, %c0_i32 : i32, i32
  }
  func.func @transform_1(%arg0: i32) -> (i32, i32) {
    %c0_i32 = arith.constant 0 : i32
    %c0_i32_0 = arith.constant 0 : i32
    %c0_i32_1 = arith.constant 0 : i32
    return %c0_i32, %c0_i32_0 : i32, i32
  }
  func.func @transform_2(%arg0: i32) -> (i32, i32) {
    %c0_i32 = arith.constant 0 : i32
    %c0_i32_0 = arith.constant 0 : i32
    return %arg0, %c0_i32 : i32, i32
  }
}

</mosaic_0001>

<bundles_post_ra>
// kernel: tpu_custom_call.1
= control target key start
LH: loop header
LB: loop body
LE: loop exit
PB: predicated region body
PF: predicated region fallthrough
CT: control target
= control target key end

     0   :  { %7 = vsyncpa [#allocation3], 0  ;;  %s566_s0 = inlined_call_operand.hbm [shape: bf16[8,16], index: 0, kind: input, shape index: {}]   ;;  %s567_s1 = inlined_call_operand.hbm [shape: bf16[272,128], index: 1, kind: input, shape index: {}]   ;;  %s568_s2 = inlined_call_operand.hbm [shape: f32[8,128], index: 2, kind: output, shape index: {}]  }
   0x1   :  { %8 = vsyncpa [#allocation6], 0 }
   0x2   :  { %9 = vsyncpa [#allocation4], 0  ;;  %s501_s9 = smov [#allocation2]   ;;  %s502_s11 = smov [#allocation5]  }
   0x3   :  { %s16_s10 = sshll.u32 %s501_s9, 4  ;;  %s25_s12 = sshll.u32 %s502_s11, 4  ;;  %s17_s10 = int_to_ptr.vmem [resolvable:$true] %s16_s10  ;;  %s523_s12 = int_to_ptr.vmem [resolvable:$true] %s25_s12 }
   0x4   :  { %s429_s15 = scalar_lea.hbm %s566_s0, 64 }
   0x5   :  { %p430_p0 = scmp.ne.s32.totalorder %s566_s0, %s429_s15  ;;  %p433_p1 = scmp.lt.u32.totalorder %s429_s15, %s566_s0 }
   0x7   :  { %p435_p2 = pnand %p433_p1, %p430_p0 }
   0x9   :  { %438 = shalt.err (!%p435_p2)
}
   0xa   :  { %s439_s20 = scalar_lea.vmem %s17_s10, 64  ;;  %p444_p4 = scmp.lt.s32.totalorder %s17_s10, %s17_s10 }
   0xb   :  { %p440_p3 = scmp.ne.s32.totalorder %s17_s10, %s439_s20  ;;  %p445_p5 = scmp.lt.s32.totalorder %s439_s20, %s439_s20 }
   0xd   :  { %p446_p6 = por %p445_p5, %p444_p4 }
   0xf   :  { %p447_p7 = pnand %p446_p6, %p440_p3 }
  0x11   :  { %450 = shalt.err (!%p447_p7)
}
  0x12   :  { %19 = dma.hbm_to_vmem [thread:$0]  %s566_s0, 64, %s17_s10, [#allocation3]  }
  0x13   :  { %s451_s25 = scalar_lea.hbm %s567_s1, 2176 }
  0x14   :  { %p452_p8 = scmp.ne.s32.totalorder %s567_s1, %s451_s25  ;;  %p455_p9 = scmp.lt.u32.totalorder %s451_s25, %s567_s1 }
  0x16   :  { %p457_p10 = pnand %p455_p9, %p452_p8 }
  0x18   :  { %460 = shalt.err (!%p457_p10)
}
  0x19   :  { %s461_s30 = scalar_lea.vmem %s523_s12, 2176  ;;  %p466_p12 = scmp.lt.s32.totalorder %s523_s12, %s523_s12 }
  0x1a   :  { %p462_p11 = scmp.ne.s32.totalorder %s523_s12, %s461_s30  ;;  %p467_p13 = scmp.lt.s32.totalorder %s461_s30, %s461_s30 }
  0x1c   :  { %p468_p0 = por %p467_p13, %p466_p12 }
  0x1e   :  { %p469_p1 = pnand %p468_p0, %p462_p11 }
  0x20   :  { %472 = shalt.err (!%p469_p1)
}
  0x21   :  { %s503_s0 = smov 64   ;;  %s504_s3 = smov 4  }
  0x22   :  { %31 = dma.hbm_to_vmem [thread:$0]  %s567_s1, 2176, %s523_s12, [#allocation6], %s503_s0, %s503_s0, %s504_s3  }
  0x23   :  { %495 = dma.done.wait [#allocation3], 64  }
  0x24   :  { %496 = vsyncadd [#allocation3], 4294967232 }
  0x25   :  { %497 = dma.done.wait [#allocation6], 2176  }
  0x26   :  { %498 = vsyncadd [#allocation6], 4294965120  ;;  %v505_v0 = vmov 0.0   ;;  %vm506_vm0 = vmmov 0   ;;  %v412_v1 = vld [vmem:[#allocation5] sm:$0xff]   ;;  %vm48_vm1 = vcmask 130048  }
  0x27   :  { %359 = vmatprep.subr.bf16.mxu0 %v505_v0  ;;  %361 = vmatprep.mubr.msk.bf16.mxu0 %vm506_vm0, %v505_v0  ;;  %v39_v2 = vld [vmem:[#allocation2] sm:$0xf]  ;;  %v413_v3 = vld [vmem:[#allocation5 + $0x8] sm:$0xff]   ;;  %v414_v4 = vld [vmem:[#allocation5 + $0x10] sm:$0xff]   ;;  %s507_s1 = smov [#allocation7]  }
  0x28   :  { %365 = vmatprep.subr.bf16.mxu1 %v505_v0  ;;  %381 = vmatprep.mubr.msk.bf16.mxu1 %vm506_vm0, %v505_v0  ;;  %v415_v5 = vld [vmem:[#allocation5 + $0x18] sm:$0xff]   ;;  %v416_v6 = vld [vmem:[#allocation5 + $0x20] sm:$0xff]   ;;  %v417_v7 = vld [vmem:[#allocation5 + $0x28] sm:$0xff]   ;;  %s311_s6 = sshll.u32 %s507_s1, 4  ;;  %s312_s6 = int_to_ptr.vmem [resolvable:$true] %s311_s6 }
  0x29   :  { %360 = vmatpush3.bf16.msra.mxu0 %v412_v1  ;;  %366 = vmatpush3.bf16.msra.mxu1 %v413_v3  ;;  %v418_v8 = vld [vmem:[#allocation5 + $0x30] sm:$0xff]   ;;  %v419_v9 = vld [vmem:[#allocation5 + $0x38] sm:$0xff]   ;;  %v420_v10 = vld [vmem:[#allocation5 + $0x40] sm:$0xff]   ;;  %s473_s7 = scalar_lea.vmem %s312_s6, 128  ;;  %p478_p3 = scmp.lt.s32.totalorder %s312_s6, %s312_s6 }
  0x2a   :  { %385 = vmatprep.subr.bf16.mxu0 %v505_v0  ;;  %367 = vmatprep.subr.bf16.mxu1 %v505_v0  ;;  %v421_v11 = vld [vmem:[#allocation5 + $0x48] sm:$0xff]   ;;  %v422_v12 = vld [vmem:[#allocation5 + $0x50] sm:$0xff]   ;;  %v423_v13 = vld [vmem:[#allocation5 + $0x58] sm:$0xff]   ;;  %p474_p2 = scmp.ne.s32.totalorder %s312_s6, %s473_s7  ;;  %p479_p4 = scmp.lt.s32.totalorder %s473_s7, %s473_s7 }
  0x2b   :  { %v424_v14 = vld [vmem:[#allocation5 + $0x60] sm:$0xff]   ;;  %v425_v15 = vld [vmem:[#allocation5 + $0x68] sm:$0xff]   ;;  %v426_v16 = vld [vmem:[#allocation5 + $0x70] sm:$0xff]  }
  0x2c   :  { %362 = vmatmul.mubr.msk.bf16.vlgmr.msra.gmra.mrb[0].mxu0 %vm48_vm1, %v39_v2  ;;  %v427_v17 = vld [vmem:[#allocation5 + $0x78] sm:$0xff]   ;;  %v428_v24 = vld [vmem:[#allocation5 + $0x80] sm:$0xff]   ;;  %p480_p5 = por %p479_p4, %p478_p3 }
  0x2d   :  { %401 = vmatprep.mubr.msk.bf16.mxu0 %vm506_vm0, %v505_v0  ;;  %368 = vmatpush3.bf16.msra.mxu1 %v414_v4 }
  0x2e   :  { %369 = vmatprep.subr.bf16.mxu1 %v505_v0  ;;  %386 = vmatpush3.bf16.msra.mxu0 %v421_v11  ;;  %p481_p6 = pnand %p480_p5, %p474_p2 }
  0x2f   :  { %387 = vmatprep.subr.bf16.mxu0 %v505_v0 }
  0x31   :  { %370 = vmatpush3.bf16.msra.mxu1 %v415_v5 }
  0x32   :  { %371 = vmatprep.subr.bf16.mxu1 %v505_v0  ;;  %388 = vmatpush3.bf16.msra.mxu0 %v422_v12 }
  0x33   :  { %389 = vmatprep.subr.bf16.mxu0 %v505_v0 }
  0x35   :  { %372 = vmatpush3.bf16.msra.mxu1 %v416_v6 }
  0x36   :  { %373 = vmatprep.subr.bf16.mxu1 %v505_v0  ;;  %390 = vmatpush3.bf16.msra.mxu0 %v423_v13 }
  0x37   :  { %391 = vmatprep.subr.bf16.mxu0 %v505_v0 }
  0x39   :  { %374 = vmatpush3.bf16.msra.mxu1 %v417_v7 }
  0x3a   :  { %375 = vmatprep.subr.bf16.mxu1 %v505_v0  ;;  %392 = vmatpush3.bf16.msra.mxu0 %v424_v14 }
  0x3b   :  { %393 = vmatprep.subr.bf16.mxu0 %v505_v0 }
  0x3d   :  { %376 = vmatpush3.bf16.msra.mxu1 %v418_v8 }
  0x3e   :  { %377 = vmatprep.subr.bf16.mxu1 %v505_v0  ;;  %394 = vmatpush3.bf16.msra.mxu0 %v425_v15 }
  0x3f   :  { %395 = vmatprep.subr.bf16.mxu0 %v505_v0 }
  0x41   :  { %378 = vmatpush3.bf16.msra.mxu1 %v419_v9 }
  0x42   :  { %379 = vmatprep.subr.bf16.mxu1 %v505_v0  ;;  %396 = vmatpush3.bf16.msra.mxu0 %v426_v16 }
  0x43   :  { %397 = vmatprep.subr.bf16.mxu0 %v505_v0 }
  0x45   :  { %380 = vmatpush3.bf16.msra.mxu1 %v420_v10 }
  0x46   :  { %398 = vmatpush3.bf16.msra.mxu0 %v427_v17 }
  0x47   :  { %399 = vmatprep.subr.bf16.mxu0 %v505_v0 }
  0x4a   :  { %400 = vmatpush3.bf16.msra.mxu0 %v428_v24 }
  0xff   :  { %v86_v18 = vpop.f32.mrb[0].mxu0 }
 0x100   :  { %v92_v19 = vmax.f32 %v86_v18, 0.0  ;;  %v363_v20 = vpop.f32.mrb[1].mxu0 }
 0x101   :  { %v89_v21 = vpop.f32.mrb[2].mxu0 }
 0x102   :  { %v93_v22 = vpack.c.bf16 %v92_v19, %v92_v19  ;;  %v364_v23 = vpop.f32.mrb[3].mxu0 }
 0x104   :  { %382 = vmatmul.mubr.bf16.vlgmr.msra.gmra.mrb[0].mxu1 %v93_v22 }
 0x1d7   :  { %v192_v25 = vpop.f32.mrb[0].mxu1 }
 0x1d8   :  { %v198_v26 = vmax.f32 %v192_v25, 0.0  ;;  %v383_v27 = vpop.f32.mrb[1].mxu1 }
 0x1d9   :  { %v195_v28 = vpop.f32.mrb[2].mxu1 }
 0x1da   :  { %v199_v29 = vpack.c.bf16 %v198_v26, %v198_v26  ;;  %v384_v30 = vpop.f32.mrb[3].mxu1 }
 0x1dc   :  { %402 = vmatmul.mubr.bf16.vlgmr.msra.gmra.mrb[4].mxu0 %v199_v29 }
 0x2af   :  { %v298_v31 = vpop.f32.mrb[4].mxu0 }
 0x2b0   :  { %304 = vst [vmem:[#allocation7] sm:$0xff] %v298_v31  ;;  %v403_v32 = vpop.f32.mrb[5].mxu0 }
 0x2b1   :  { %v301_v33 = vpop.f32.mrb[6].mxu0 }
 0x2b2   :  { %484 = shalt.err (!%p481_p6)
}
 0x2b3   :  { %s485_s10 = scalar_lea.hbm %s568_s2, 128 }
 0x2b4   :  { %p486_p7 = scmp.ne.s32.totalorder %s568_s2, %s485_s10  ;;  %p489_p8 = scmp.lt.u32.totalorder %s485_s10, %s568_s2 }
 0x2b6   :  { %p491_p9 = pnand %p489_p8, %p486_p7 }
 0x2b8   :  { %494 = shalt.err (!%p491_p9)
}
 0x2b9   :  { %314 = dma.vmem_to_hbm [thread:$0]  %s312_s6, 128, %s568_s2, [#allocation4]   ;;  %v404_v34 = vpop.f32.mrb[7].mxu0 }
 0x2ba   :  { %499 = dma.done.wait [#allocation4], 128  }
 0x2bb   :  { %500 = vsyncadd [#allocation4], 4294967168 }
 0x2bc   :  { %318 = vsyncpa [#allocation3], 1 }
 0x2bd   :  { %319 = vsyncpa [#allocation6], 1 }
 0x2be   :  { %320 = vsyncpa [#allocation4], 1 }

</bundles_post_ra>
